<compile_context>
chip_gen: v6e
topology: v6e:2x2x1
jax: 0.10.0
libtpu: 0.0.40
codegen_flags: <defaults>
</compile_context>

<pallas_src>
import functools

import jax
import jax.numpy as jnp
from jax.experimental import pallas as pl
from jax.experimental.pallas import tpu as pltpu


_SUBLANE = 8
# Padded per-buffer block budget: a (tm, 3) block pads its lane dim 3 -> 128,
# so its real VMEM footprint is tm * 128 * itemsize bytes.
_BLOCK_BUDGET_BYTES = 2 * 1024 * 1024
# At or below this many rows use one full-array block (launch cost dominates).
_SINGLE_BLOCK_ROWS = 1024
# Never shrink a tile below this many rows (keeps per-step overhead < ~1%).
_MIN_TILE_ROWS = 1024


def _round_up(v: int, m: int) -> int:
    return ((v + m - 1) // m) * m


def _limiter_kernel(x_ref, o_ref, *, scale: float, shift: float):
    # x_ref / o_ref: (tm, 3) tiles -- rows on sublanes, 3 channels on lanes.
    # Bit-exact pass-through of all channels, then overwrite channel 1.
    o_ref[...] = x_ref[...]
    x0 = x_ref[:, 0:1].astype(jnp.float32)
    x1 = x_ref[:, 1:2].astype(jnp.float32)
    # 1 - sigmoid(z) == 1 / (1 + exp(z)); exp uses the otherwise-idle EUP
    # slot, exact divide is free (kernel is HBM-bound).
    gate = 1.0 / (1.0 + jnp.exp((x0 - shift) * scale))
    o_ref[:, 1:2] = (x1 * gate).astype(o_ref.dtype)


def _plan_row_tile(n: int, itemsize: int):
    """Pick (row_tile, grid_steps) for an (n, 3) row-major array."""
    if n <= _SINGLE_BLOCK_ROWS:
        return n, 1  # full-array block; exempt from (8, 128) divisibility
    # Largest tile whose lane-padded footprint stays within the budget.
    tm_max = max(
        _SUBLANE,
        (_BLOCK_BUDGET_BYTES // (128 * itemsize)) // _SUBLANE * _SUBLANE,
    )
    # Aim for >= 4 grid steps (DMA/compute pipelining; v7x shards "parallel"
    # axes across its two TensorCores) but never below _MIN_TILE_ROWS rows.
    tm = min(tm_max, max(_MIN_TILE_ROWS, _round_up(pl.cdiv(n, 4), _SUBLANE)))
    tm = min(tm, _round_up(n, _SUBLANE))
    return tm, pl.cdiv(n, tm)


def action_holonomic_limiter(x, begin: float = 0.0, end: float = 1.0):
    # Hardening: begin == end would give area == 0 -> inf scale / NaN gate.
    if begin >= end:
        raise ValueError(f"begin {begin} must be smaller then end {end}")
    if x.ndim != 2 or x.shape[1] != 3:
        raise ValueError(
            f"Expected input tensor with shape [*, 3], but got shape {x.shape}")

    area = end - begin
    shift = end - area * 0.5
    scale = 10.0 / area

    n = x.shape[0]
    tm, steps = _plan_row_tile(n, jnp.dtype(x.dtype).itemsize)

    kernel = functools.partial(
        _limiter_kernel, scale=float(scale), shift=float(shift))
    return pl.pallas_call(
        kernel,
        out_shape=jax.ShapeDtypeStruct((n, 3), x.dtype),
        grid=(steps,),
        in_specs=[pl.BlockSpec((tm, 3), lambda i: (i, 0))],
        out_specs=pl.BlockSpec((tm, 3), lambda i: (i, 0)),
        compiler_params=pltpu.CompilerParams(
            dimension_semantics=("parallel",),
        ),
    )(x)


def _reference(x, begin=0.0, end=1.0):
    area = end - begin
    shift = end - area * 0.5
    scale = 10.0 / area
    xf = x.astype(jnp.float32)
    gate = 1.0 - jax.nn.sigmoid(scale * (xf[:, 0] - shift))
    out = xf.at[:, 1].set(xf[:, 1] * gate)
    return out.astype(x.dtype)


if __name__ == "__main__":
    key = jax.random.PRNGKey(0)
    k1, k2, k3 = jax.random.split(key, 3)

    cases = [
        # Small case: single full-array block path.
        jax.random.normal(k1, (16, 3), dtype=jnp.float32),
        # Larger case: tiled path with 2 grid steps and a partial last block.
        jax.random.normal(k2, (2000, 3), dtype=jnp.float32),
        # bf16 case: gate still computed in float32.
        jax.random.normal(k3, (64, 3), dtype=jnp.bfloat16),
    ]

    for x in cases:
        out = jax.block_until_ready(
            action_holonomic_limiter(x, begin=0.0, end=1.0))
        ref = _reference(x, begin=0.0, end=1.0)
        assert out.shape == x.shape and out.dtype == x.dtype
        # Pass-through channels must be bit-exact.
        assert jnp.array_equal(out[:, 0], x[:, 0])
        assert jnp.array_equal(out[:, 2], x[:, 2])
        # Gated channel: exact f32 math -> tight tolerance.
        tol = 1e-2 if x.dtype == jnp.bfloat16 else 1e-5
        assert jnp.allclose(out[:, 1].astype(jnp.float32),
                            ref[:, 1].astype(jnp.float32),
                            atol=tol, rtol=tol)

    print("KERNEL_OK")
</pallas_src>

<mosaic_0001>
module attributes {stable_mosaic.version = 11 : i64} {
  func.func @_limiter_kernel(%arg0: i32, %arg1: memref<16x3xf32, #tpu.memory_space<vmem>>, %arg2: memref<16x3xf32, #tpu.memory_space<vmem>>) attributes {dimension_semantics = [#tpu.dimension_semantics<parallel>], iteration_bounds = array<i64: 1>, scalar_prefetch = 0 : i64, scratch_operands = 0 : i64, tpu.core_type = #tpu.core_type<tc>, window_params = [{transform_indices = @transform_0, window_bounds = array<i64: 16, 3>}, {transform_indices = @transform_1, window_bounds = array<i64: 16, 3>}]} {
    %c0 = arith.constant 0 : index
    %c0_0 = arith.constant 0 : index
    %0 = vector.load %arg1[%c0, %c0_0] : memref<16x3xf32, #tpu.memory_space<vmem>>, vector<16x3xf32>
    %c0_1 = arith.constant 0 : index
    %c0_2 = arith.constant 0 : index
    %1 = vector.load %arg2[%c0_1, %c0_2] : memref<16x3xf32, #tpu.memory_space<vmem>>, vector<16x3xf32>
    tpu.vector_store %arg2[%c0_1, %c0_2], %0 {strides = array<i32>} : memref<16x3xf32, #tpu.memory_space<vmem>>, vector<16x3xf32>,
    %c0_3 = arith.constant 0 : index
    %c0_4 = arith.constant 0 : index
    %2 = vector.load %arg1[%c0_3, %c0_4] : memref<16x3xf32, #tpu.memory_space<vmem>>, vector<16x1xf32>
    %c0_5 = arith.constant 0 : index
    %c1 = arith.constant 1 : index
    %3 = vector.load %arg1[%c0_5, %c1] : memref<16x3xf32, #tpu.memory_space<vmem>>, vector<16x1xf32>
    %cst = arith.constant 5.000000e-01 : f32
    %4 = vector.broadcast %cst : f32 to vector<16x1xf32>
    %5 = arith.subf %2, %4 : vector<16x1xf32>
    %cst_6 = arith.constant 1.000000e+01 : f32
    %6 = vector.broadcast %cst_6 : f32 to vector<16x1xf32>
    %7 = arith.mulf %5, %6 : vector<16x1xf32>
    %8 = math.exp %7 : vector<16x1xf32>
    %cst_7 = arith.constant 1.000000e+00 : f32
    %9 = vector.broadcast %cst_7 : f32 to vector<16x1xf32>
    %10 = arith.addf %9, %8 : vector<16x1xf32>
    %cst_8 = arith.constant 1.000000e+00 : f32
    %11 = vector.broadcast %cst_8 : f32 to vector<16x1xf32>
    %12 = arith.divf %11, %10 : vector<16x1xf32>
    %13 = arith.mulf %3, %12 : vector<16x1xf32>
    %c0_9 = arith.constant 0 : index
    %c1_10 = arith.constant 1 : index
    %14 = vector.load %arg2[%c0_9, %c1_10] : memref<16x3xf32, #tpu.memory_space<vmem>>, vector<16x1xf32>
    tpu.vector_store %arg2[%c0_9, %c1_10], %13 {strides = array<i32>} : memref<16x3xf32, #tpu.memory_space<vmem>>, vector<16x1xf32>,
    return
  }
  func.func @transform_0(%arg0: i32) -> (i32, i32) {
    %c0_i32 = arith.constant 0 : i32
    %c0_i32_0 = arith.constant 0 : i32
    return %arg0, %c0_i32 : i32, i32
  }
  func.func @transform_1(%arg0: i32) -> (i32, i32) {
    %c0_i32 = arith.constant 0 : i32
    %c0_i32_0 = arith.constant 0 : i32
    return %arg0, %c0_i32 : i32, i32
  }
}

</mosaic_0001>

<bundles_post_ra>
// kernel: tpu_custom_call.1
= control target key start
LH: loop header
LB: loop body
LE: loop exit
PB: predicated region body
PF: predicated region fallthrough
CT: control target
= control target key end

     0   :  { %vm10_vm0 = vcmask 23552   ;;  %vm39_vm1 = vcmask 15368   ;;  %s86_s0 = inlined_call_operand.vmem [shape: f32[16,3], index: 0, kind: input, shape index: {}]   ;;  %s87_s1 = inlined_call_operand.vmem [shape: f32[16,3], index: 1, kind: output, shape index: {}]  }
   0x1   :  { %v13_v0 = vld [vmem:[%s86_s0] sm:$0xff]  ;;  %v14_v1 = vld [vmem:[%s86_s0 + $0x8] sm:$0xff]  ;;  %s57_s0 = smov 1  }
   0x2   :  { %v46_v2 = vadd.f32 -0.5, %v13_v0  ;;  %v47_v3 = vadd.f32 -0.5, %v14_v1  ;;  %11 = vst.msk [vmem:[%s87_s1] sm:$0xff] %vm10_vm0, %v13_v0  ;;  %12 = vst.msk [vmem:[%s87_s1 + $0x8] sm:$0xff] %vm10_vm0, %v14_v1 }
   0x4   :  { %v17_v4 = vmul.f32 10.0, %v46_v2  ;;  %v18_v5 = vmul.f32 10.0, %v47_v3 }
   0x6   :  { %v19_v6 = vmul.f32 1.442695, %v17_v4  ;;  %v21_v7 = vmul.f32 1.442695, %v18_v5 }
   0x8   :  { %49 = vpow2.f32 %v19_v6 }
   0x9   :  { %51 = vpow2.f32 %v21_v7 }
  0x15   :  { %v50_v8 = vpop.eup %49 }
  0x16   :  { %v52_v9 = vpop.eup %51  ;;  %v23_v10 = vadd.f32 1.0, %v50_v8 }
  0x17   :  { %v24_v11 = vadd.f32 1.0, %v52_v9 }
  0x18   :  { %53 = vrcp.f32 %v23_v10 }
  0x19   :  { %55 = vrcp.f32 %v24_v11 }
  0x25   :  { %v54_v12 = vpop.eup %53 }
  0x26   :  { %31 = vrot.lane.b32.xlu0 %v54_v12, %s57_s0  ;;  %v56_v13 = vpop.eup %55 }
  0x2a   :  { %33 = vrot.lane.b32.xlu0 %v56_v13, %s57_s0 }
  0x98   :  { %v32_v14 = vpop.permute.xlu0 %31 }
  0x99   :  { %v37_v15 = vmul.f32 %v32_v14, %v13_v0 }
  0x9b   :  { %40 = vst.msk [vmem:[%s87_s1] sm:$0xff] %vm39_vm1, %v37_v15 }
  0x9c   :  { %v34_v16 = vpop.permute.xlu0 %33 }
  0x9d   :  { %v38_v17 = vmul.f32 %v34_v16, %v14_v1 }
  0x9f   :  { %41 = vst.msk [vmem:[%s87_s1 + $0x8] sm:$0xff] %vm39_vm1, %v38_v17 }

</bundles_post_ra>
